<compile_context>
chip_gen: v6e
topology: v6e:2x2x1
jax: 0.10.0
libtpu: 0.0.40
codegen_flags: <defaults>
</compile_context>

<pallas_src>
import math

import numpy as np
import jax
import jax.numpy as jnp
from jax.experimental import pallas as pl
from jax.experimental.pallas import tpu as pltpu


# ----------------------------------------------------------------------------
# DCT filter construction (mirrors MultiSpectralDCTLayer.get_dct_filter)
# ----------------------------------------------------------------------------
def build_dct_filter(tile_x, tile_y, channel, frenum):
    def bf(pos, freq, pos_total):
        r = np.cos(np.pi * freq * (pos + 0.5) / pos_total) / np.sqrt(pos_total)
        if freq != 0:
            r = r * np.sqrt(2.0)
        return r

    filt = np.zeros((channel, tile_x, tile_y), dtype=np.float32)
    c_part = channel // (frenum * frenum)
    px = np.arange(tile_x, dtype=np.float64)
    py = np.arange(tile_y, dtype=np.float64)
    for i in range(frenum):
        for j in range(frenum):
            block = bf(px, i, tile_x)[:, None] * bf(py, j, tile_y)[None, :]
            lo = i * c_part * frenum + j * c_part
            hi = i * c_part * frenum + (j + 1) * c_part
            filt[lo:hi] = block.astype(np.float32)
    return jnp.asarray(filt)


# ----------------------------------------------------------------------------
# Pallas kernel: one (nb, ts, L) tile of the product
# ----------------------------------------------------------------------------
def dct_mul_kernel(w_ref, x_ref, o_ref):
    # Pure VPU elementwise multiply on a lane-dense tile.  The multiply runs in
    # the promoted dtype (e.g. bf16 activations x f32 DCT weights -> f32),
    # matching the PyTorch reference which keeps the filter in float32.
    o_ref[...] = (x_ref[...] * w_ref[...]).astype(o_ref.dtype)


# ----------------------------------------------------------------------------
# Helpers
# ----------------------------------------------------------------------------
def _pick_tile(total, unit, cap):
    """Largest multiple of `unit` that divides `total`, at most `cap`
    (falls back to the full extent, which is always a legal block size)."""
    if total <= cap:
        return total
    d = (cap // unit) * unit
    while d >= unit:
        if total % d == 0:
            return d
        d -= unit
    return total


def _vmem_capacity_bytes(default=64 << 20):
    """Physical VMEM of the current chip; conservative (v7x) default."""
    try:
        info = pltpu.get_tpu_info()
        for attr in ("vmem_capacity_bytes", "vmem_size_bytes", "vmem_bytes"):
            v = getattr(info, attr, None)
            if v:
                return int(v)
    except Exception:
        pass
    return default


# ----------------------------------------------------------------------------
# Wrapper
# ----------------------------------------------------------------------------
def multispectral_dct_forward(x, dct_weight, *, tile_bytes=None, alias_x=False):
    """out = x * dct_weight (broadcast over batch), computed in lane-dense tiles."""
    N, C, H, W = x.shape
    assert dct_weight.shape == (C, H, W)
    F = C * H * W
    out_dtype = jnp.result_type(x.dtype, dct_weight.dtype)
    ebytes = jnp.dtype(out_dtype).itemsize
    xbytes = jnp.dtype(x.dtype).itemsize
    wbytes = jnp.dtype(dct_weight.dtype).itemsize

    # Generation-aware budgets: keep (2 w + 2 x + 2 out) buffers comfortably
    # under physical VMEM (64 MiB on v7x, 128 MiB on v5e/v6e) with headroom
    # for Mosaic internal scratch.
    vmem_cap = _vmem_capacity_bytes()
    if tile_bytes is None:
        tile_bytes = int(min(8 << 20, max(1 << 20, vmem_cap // 12)))
    vmem_limit = int(min(vmem_cap * 3 // 4, 96 << 20))

    # ---- lane-dense layout ---------------------------------------------------
    # Row-major flatten of (c,h,w) into F, re-factored as (S, L) with L a
    # multiple of 128.  No data movement (contiguous reshape), and the output
    # stores are unmasked full-width even when H*W is small / odd (e.g. 7x7).
    if F % 128 == 0:
        L = 512 if F % 512 == 0 else (256 if F % 256 == 0 else 128)
    else:
        # Rare fallback: keep channels on sublanes, HW on lanes (masked stores,
        # but always correct via the full-extent block rule).
        L = H * W
    S = F // L
    x2 = x.reshape(N, S, L)
    w2 = dct_weight.reshape(S, L)  # stays float32; no downcast

    # ---- tiling ----------------------------------------------------------------
    # Sublane tiling first (multiple of 8 or full extent), then fold batch
    # elements into the block so each grid step moves ~tile_bytes of data.
    ts = _pick_tile(S, 8, max(8, tile_bytes // (L * ebytes)))
    nb = _pick_tile(N, 1, max(1, tile_bytes // (ts * L * ebytes)))

    grid = (S // ts, N // nb)  # batch innermost -> weight tile reused across batch

    extra = {}
    if alias_x and x2.dtype == out_dtype:
        # In-place product when the caller donates x (x2 is input index 1).
        extra["input_output_aliases"] = {1: 0}

    out = pl.pallas_call(
        dct_mul_kernel,
        out_shape=jax.ShapeDtypeStruct((N, S, L), out_dtype),
        grid_spec=pltpu.PrefetchScalarGridSpec(
            num_scalar_prefetch=0,
            grid=grid,
            in_specs=[
                # Weight block index is independent of the batch grid axis, so
                # the same VMEM tile is reused (no re-DMA) across batch steps.
                pl.BlockSpec((ts, L), lambda s, n: (s, 0)),
                pl.BlockSpec((nb, ts, L), lambda s, n: (n, s, 0)),
            ],
            out_specs=pl.BlockSpec((nb, ts, L), lambda s, n: (n, s, 0)),
        ),
        compiler_params=pltpu.CompilerParams(
            # All output blocks are disjoint; both axes parallel so the grid
            # still shards across v7x's two TensorCores even when S//ts == 1
            # (the at-most-once-per-core weight re-DMA is negligible).
            dimension_semantics=("parallel", "parallel"),
            vmem_limit_bytes=vmem_limit,
        ),
        cost_estimate=pl.CostEstimate(
            flops=N * F,
            transcendentals=0,
            bytes_accessed=N * F * (xbytes + ebytes) + F * wbytes,
        ),
        **extra,
    )(w2, x2)

    # TODO(synk): FcaNet immediately does sum(x*weight, dim=[2,3]) after this
    # layer; fusing that reduction here would roughly halve HBM traffic, but it
    # is outside this module's forward() spec, so only the product is emitted.
    return out.reshape(N, C, H, W)


# ----------------------------------------------------------------------------
# Pure-JAX reference (exact spec semantics)
# ----------------------------------------------------------------------------
def multispectral_dct_reference(x, dct_weight):
    return x * dct_weight[None]


if __name__ == "__main__":
    key = jax.random.PRNGKey(0)
    k1, k2 = jax.random.split(key)

    # Test 1: small square map, f32 activations.
    N, C, H, W, frenum = 2, 64, 16, 16, 8
    assert C % H == 0 and C % (frenum * frenum) == 0
    x = jax.random.normal(k1, (N, C, H, W), jnp.float32)
    w = build_dct_filter(H, W, C, frenum)
    out = jax.block_until_ready(multispectral_dct_forward(x, w))
    np.testing.assert_allclose(
        np.asarray(out), np.asarray(multispectral_dct_reference(x, w)),
        rtol=1e-6, atol=1e-6)

    # Test 2: FcaNet-style small spatial map (HW=16, not a multiple of 128)
    # with bf16 activations against the float32 DCT bank; exercises the
    # flattened lane-dense layout and the dtype-promotion path.
    N2, C2, H2, W2, frenum2 = 2, 128, 4, 4, 2
    assert C2 % H2 == 0 and C2 % (frenum2 * frenum2) == 0
    xb = jax.random.normal(k2, (N2, C2, H2, W2), jnp.bfloat16)
    wb = build_dct_filter(H2, W2, C2, frenum2)
    out2 = jax.block_until_ready(multispectral_dct_forward(xb, wb))
    ref2 = xb.astype(jnp.float32) * wb[None]
    np.testing.assert_allclose(np.asarray(out2), np.asarray(ref2),
                               rtol=1e-6, atol=1e-6)

    print("KERNEL_OK")
</pallas_src>

<mosaic_0001>
module attributes {stable_mosaic.version = 11 : i64} {
  func.func @dct_mul_kernel(%arg0: i32, %arg1: i32, %arg2: memref<32x512xf32, #tpu.memory_space<vmem>>, %arg3: memref<2x32x512xf32, #tpu.memory_space<vmem>>, %arg4: memref<2x32x512xf32, #tpu.memory_space<vmem>>) attributes {dimension_semantics = [#tpu.dimension_semantics<parallel>, #tpu.dimension_semantics<parallel>], iteration_bounds = array<i64: 1, 1>, scalar_prefetch = 0 : i64, scratch_operands = 0 : i64, tpu.core_type = #tpu.core_type<tc>, window_params = [{transform_indices = @transform_0, window_bounds = array<i64: 32, 512>}, {transform_indices = @transform_1, window_bounds = array<i64: 2, 32, 512>}, {transform_indices = @transform_2, window_bounds = array<i64: 2, 32, 512>}]} {
    %c0 = arith.constant 0 : index
    %c0_0 = arith.constant 0 : index
    %c0_1 = arith.constant 0 : index
    %0 = vector.load %arg3[%c0, %c0_0, %c0_1] : memref<2x32x512xf32, #tpu.memory_space<vmem>>, vector<2x32x512xf32>
    %c0_2 = arith.constant 0 : index
    %c0_3 = arith.constant 0 : index
    %1 = vector.load %arg2[%c0_2, %c0_3] : memref<32x512xf32, #tpu.memory_space<vmem>>, vector<32x512xf32>
    %2 = vector.shape_cast %1 : vector<32x512xf32> to vector<1x32x512xf32>
    %3 = vector.broadcast %2 : vector<1x32x512xf32> to vector<2x32x512xf32>
    %4 = arith.mulf %0, %3 : vector<2x32x512xf32>
    %c0_4 = arith.constant 0 : index
    %c0_5 = arith.constant 0 : index
    %c0_6 = arith.constant 0 : index
    %5 = vector.load %arg4[%c0_4, %c0_5, %c0_6] : memref<2x32x512xf32, #tpu.memory_space<vmem>>, vector<2x32x512xf32>
    tpu.vector_store %arg4[%c0_4, %c0_5, %c0_6], %4 {strides = array<i32>} : memref<2x32x512xf32, #tpu.memory_space<vmem>>, vector<2x32x512xf32>,
    return
  }
  func.func @transform_0(%arg0: i32, %arg1: i32) -> (i32, i32) {
    %c0_i32 = arith.constant 0 : i32
    %c0_i32_0 = arith.constant 0 : i32
    return %arg0, %c0_i32 : i32, i32
  }
  func.func @transform_1(%arg0: i32, %arg1: i32) -> (i32, i32, i32) {
    %c0_i32 = arith.constant 0 : i32
    %c0_i32_0 = arith.constant 0 : i32
    return %arg1, %arg0, %c0_i32 : i32, i32, i32
  }
  func.func @transform_2(%arg0: i32, %arg1: i32) -> (i32, i32, i32) {
    %c0_i32 = arith.constant 0 : i32
    %c0_i32_0 = arith.constant 0 : i32
    return %arg1, %arg0, %c0_i32 : i32, i32, i32
  }
}

</mosaic_0001>

<bundles_post_ra>
// kernel: tpu_custom_call.1
= control target key start
LH: loop header
LB: loop body
LE: loop exit
PB: predicated region body
PF: predicated region fallthrough
CT: control target
= control target key end

     0   :  { %7 = vsyncpa [#allocation3], 0  ;;  %s287_s0 = inlined_call_operand.hbm [shape: f32[32,512], index: 0, kind: input, shape index: {}]   ;;  %s288_s1 = inlined_call_operand.hbm [shape: f32[2,32,512], index: 1, kind: input, shape index: {}]   ;;  %s289_s2 = inlined_call_operand.hbm [shape: f32[2,32,512], index: 2, kind: output, shape index: {}]  }
   0x1   :  { %8 = vsyncpa [#allocation6], 0 }
   0x2   :  { %9 = vsyncpa [#allocation4], 0  ;;  %s241_s9 = smov [#allocation2]  }
   0x3   :  { %s15_s10 = sshll.u32 %s241_s9, 4  ;;  %s16_s10 = int_to_ptr.vmem [resolvable:$true] %s15_s10 }
   0x4   :  { %s183_s11 = scalar_lea.vmem %s16_s10, 2048  ;;  %p188_p1 = scmp.lt.s32.totalorder %s16_s10, %s16_s10 }
   0x5   :  { %p184_p0 = scmp.ne.s32.totalorder %s16_s10, %s183_s11  ;;  %p189_p2 = scmp.lt.s32.totalorder %s183_s11, %s183_s11 }
   0x7   :  { %p190_p3 = por %p189_p2, %p188_p1 }
   0x9   :  { %p191_p4 = pnand %p190_p3, %p184_p0 }
   0xb   :  { %194 = shalt.err (!%p191_p4)
}
   0xc   :  { %s242_s12 = smov 512   ;;  %s243_s13 = smov 32  }
   0xd   :  { %21 = dma.hbm_to_vmem [thread:$0]  %s287_s0, 2048, %s16_s10, [#allocation3], %s242_s12, %s242_s12, %s243_s13  }
   0xe   :  { %s244_s16 = smov [#allocation5]  }
   0xf   :  { %s27_s17 = sshll.u32 %s244_s16, 4  ;;  %s28_s17 = int_to_ptr.vmem [resolvable:$true] %s27_s17 }
  0x10   :  { %s203_s18 = scalar_lea.vmem %s28_s17, 4096  ;;  %p208_p6 = scmp.lt.s32.totalorder %s28_s17, %s28_s17 }
  0x11   :  { %p204_p5 = scmp.ne.s32.totalorder %s28_s17, %s203_s18  ;;  %p209_p7 = scmp.lt.s32.totalorder %s203_s18, %s203_s18 }
  0x13   :  { %p210_p8 = por %p209_p7, %p208_p6 }
  0x15   :  { %p211_p9 = pnand %p210_p8, %p204_p5 }
  0x17   :  { %214 = shalt.err (!%p211_p9)
}
  0x18   :  { %33 = dma.hbm_to_vmem [thread:$0]  %s288_s1, 4096, %s28_s17, [#allocation6], %s242_s12, %s242_s12, %s243_s13  }
  0x19   :  { %235 = dma.done.wait [#allocation3], 2048  }
  0x1a   :  { %236 = vsyncadd [#allocation3], 4294965248 }
  0x1b   :  { %237 = dma.done.wait [#allocation6], 4096  }
  0x1c   :  { %238 = vsyncadd [#allocation6], 4294963200  ;;  %v40_v0 = vld [vmem:[#allocation5] sm:$0xff]  ;;  %v41_v2 = vld [vmem:[#allocation5 + $0x8] sm:$0xff]  ;;  %s245_s0 = smov [#allocation7]  }
  0x1d   :  { %v72_v1 = vld [vmem:[#allocation2] sm:$0xff]  ;;  %v273_v4 = vld [vmem:[#allocation2 + $0x8] sm:$0xff]  ;;  %v42_v5 = vld [vmem:[#allocation5 + $0x10] sm:$0xff]  ;;  %s157_s1 = sshll.u32 %s245_s0, 4  ;;  %s158_s1 = int_to_ptr.vmem [resolvable:$true] %s157_s1 }
  0x1e   :  { %v88_v3 = vmul.f32 %v72_v1, %v40_v0  ;;  %v275_v6 = vld [vmem:[#allocation2 + $0x10] sm:$0xff]  ;;  %v89_v7 = vmul.f32 %v273_v4, %v41_v2  ;;  %v43_v9 = vld [vmem:[#allocation5 + $0x18] sm:$0xff]  ;;  %v44_v11 = vld [vmem:[#allocation5 + $0x20] sm:$0xff]  ;;  %s215_s21 = scalar_lea.vmem %s158_s1, 4096  ;;  %p220_p11 = scmp.lt.s32.totalorder %s158_s1, %s158_s1 }
  0x1f   :  { %v90_v8 = vmul.f32 %v275_v6, %v42_v5  ;;  %v75_v10 = vld [vmem:[#allocation2 + $0x18] sm:$0xff]  ;;  %v76_v13 = vld [vmem:[#allocation2 + $0x20] sm:$0xff]  ;;  %v45_v14 = vld [vmem:[#allocation5 + $0x28] sm:$0xff]  ;;  %p216_p10 = scmp.ne.s32.totalorder %s158_s1, %s215_s21  ;;  %p221_p12 = scmp.lt.s32.totalorder %s215_s21, %s215_s21 }
  0x20   :  { %120 = vst [vmem:[#allocation7] sm:$0xff] %v88_v3  ;;  %v91_v12 = vmul.f32 %v75_v10, %v43_v9  ;;  %v77_v15 = vld [vmem:[#allocation2 + $0x28] sm:$0xff]  ;;  %121 = vst [vmem:[#allocation7 + $0x8] sm:$0xff] %v89_v7  ;;  %v92_v16 = vmul.f32 %v76_v13, %v44_v11  ;;  %v46_v18 = vld [vmem:[#allocation5 + $0x30] sm:$0xff] }
  0x21   :  { %122 = vst [vmem:[#allocation7 + $0x10] sm:$0xff] %v90_v8  ;;  %v93_v17 = vmul.f32 %v77_v15, %v45_v14  ;;  %v78_v19 = vld [vmem:[#allocation2 + $0x30] sm:$0xff]  ;;  %v47_v20 = vld [vmem:[#allocation5 + $0x38] sm:$0xff]  ;;  %v48_v23 = vld [vmem:[#allocation5 + $0x40] sm:$0xff]  ;;  %p222_p13 = por %p221_p12, %p220_p11 }
  0x22   :  { %123 = vst [vmem:[#allocation7 + $0x18] sm:$0xff] %v91_v12  ;;  %v94_v21 = vmul.f32 %v78_v19, %v46_v18  ;;  %v79_v22 = vld [vmem:[#allocation2 + $0x38] sm:$0xff]  ;;  %v80_v24 = vld [vmem:[#allocation2 + $0x40] sm:$0xff]  ;;  %124 = vst [vmem:[#allocation7 + $0x20] sm:$0xff] %v92_v16 }
  0x23   :  { %125 = vst [vmem:[#allocation7 + $0x28] sm:$0xff] %v93_v17  ;;  %v95_v25 = vmul.f32 %v79_v22, %v47_v20  ;;  %v96_v26 = vmul.f32 %v80_v24, %v48_v23  ;;  %v49_v27 = vld [vmem:[#allocation5 + $0x48] sm:$0xff]  ;;  %v50_v29 = vld [vmem:[#allocation5 + $0x50] sm:$0xff]  ;;  %v51_v32 = vld [vmem:[#allocation5 + $0x58] sm:$0xff]  ;;  %p223_p0 = pnand %p222_p13, %p216_p10 }
  0x24   :  { %v81_v28 = vld [vmem:[#allocation2 + $0x48] sm:$0xff]  ;;  %126 = vst [vmem:[#allocation7 + $0x30] sm:$0xff] %v94_v21  ;;  %v82_v31 = vld [vmem:[#allocation2 + $0x50] sm:$0xff]  ;;  %v83_v33 = vld [vmem:[#allocation2 + $0x58] sm:$0xff] }
  0x25   :  { %v97_v30 = vmul.f32 %v81_v28, %v49_v27  ;;  %127 = vst [vmem:[#allocation7 + $0x38] sm:$0xff] %v95_v25  ;;  %128 = vst [vmem:[#allocation7 + $0x40] sm:$0xff] %v96_v26  ;;  %v98_v34 = vmul.f32 %v82_v31, %v50_v29  ;;  %v99_v35 = vmul.f32 %v83_v33, %v51_v32  ;;  %v52_v36 = vld [vmem:[#allocation5 + $0x60] sm:$0xff]  ;;  %v53_v38 = vld [vmem:[#allocation5 + $0x68] sm:$0xff] }
  0x26   :  { %v84_v37 = vld [vmem:[#allocation2 + $0x60] sm:$0xff]  ;;  %v85_v40 = vld [vmem:[#allocation2 + $0x68] sm:$0xff]  ;;  %v54_v41 = vld [vmem:[#allocation5 + $0x70] sm:$0xff] }
  0x27   :  { %129 = vst [vmem:[#allocation7 + $0x48] sm:$0xff] %v97_v30  ;;  %v100_v39 = vmul.f32 %v84_v37, %v52_v36  ;;  %v86_v42 = vld [vmem:[#allocation2 + $0x70] sm:$0xff]  ;;  %130 = vst [vmem:[#allocation7 + $0x50] sm:$0xff] %v98_v34  ;;  %v101_v43 = vmul.f32 %v85_v40, %v53_v38  ;;  %v55_v45 = vld [vmem:[#allocation5 + $0x78] sm:$0xff] }
  0x28   :  { %131 = vst [vmem:[#allocation7 + $0x58] sm:$0xff] %v99_v35  ;;  %v102_v44 = vmul.f32 %v86_v42, %v54_v41  ;;  %v87_v46 = vld [vmem:[#allocation2 + $0x78] sm:$0xff]  ;;  %v56_v47 = vld [vmem:[#allocation5 + $0x80] sm:$0xff]  ;;  %v57_v50 = vld [vmem:[#allocation5 + $0x88] sm:$0xff] }
  0x29   :  { %132 = vst [vmem:[#allocation7 + $0x60] sm:$0xff] %v100_v39  ;;  %v103_v48 = vmul.f32 %v87_v46, %v55_v45  ;;  %v104_v49 = vmul.f32 %v72_v1, %v56_v47  ;;  %v58_v51 = vld [vmem:[#allocation5 + $0x90] sm:$0xff]  ;;  %v59_v52 = vld [vmem:[#allocation5 + $0x98] sm:$0xff]  ;;  %133 = vst [vmem:[#allocation7 + $0x68] sm:$0xff] %v101_v43  ;;  %v105_v53 = vmul.f32 %v273_v4, %v57_v50 }
  0x2a   :  { %134 = vst [vmem:[#allocation7 + $0x70] sm:$0xff] %v102_v44  ;;  %v106_v54 = vmul.f32 %v275_v6, %v58_v51  ;;  %v107_v55 = vmul.f32 %v75_v10, %v59_v52  ;;  %v60_v56 = vld [vmem:[#allocation5 + $0xa0] sm:$0xff]  ;;  %v61_v57 = vld [vmem:[#allocation5 + $0xa8] sm:$0xff]  ;;  %v62_v58 = vld [vmem:[#allocation5 + $0xb0] sm:$0xff] }
  0x2b   :  { %135 = vst [vmem:[#allocation7 + $0x78] sm:$0xff] %v103_v48  ;;  %136 = vst [vmem:[#allocation7 + $0x80] sm:$0xff] %v104_v49  ;;  %v108_v59 = vmul.f32 %v76_v13, %v60_v56  ;;  %v109_v60 = vmul.f32 %v77_v15, %v61_v57  ;;  %v110_v61 = vmul.f32 %v78_v19, %v62_v58  ;;  %v63_v62 = vld [vmem:[#allocation5 + $0xb8] sm:$0xff]  ;;  %v64_v63 = vld [vmem:[#allocation5 + $0xc0] sm:$0xff] }
  0x2c   :  { %v65_v0 = vld [vmem:[#allocation5 + $0xc8] sm:$0xff]  ;;  %137 = vst [vmem:[#allocation7 + $0x88] sm:$0xff] %v105_v53  ;;  %138 = vst [vmem:[#allocation7 + $0x90] sm:$0xff] %v106_v54  ;;  %v111_v1 = vmul.f32 %v79_v22, %v63_v62  ;;  %v112_v2 = vmul.f32 %v80_v24, %v64_v63  ;;  %v66_v4 = vld [vmem:[#allocation5 + $0xd0] sm:$0xff] }
  0x2d   :  { %139 = vst [vmem:[#allocation7 + $0x98] sm:$0xff] %v107_v55  ;;  %v113_v3 = vmul.f32 %v81_v28, %v65_v0  ;;  %v67_v5 = vld [vmem:[#allocation5 + $0xd8] sm:$0xff]  ;;  %v68_v6 = vld [vmem:[#allocation5 + $0xe0] sm:$0xff]  ;;  %140 = vst [vmem:[#allocation7 + $0xa0] sm:$0xff] %v108_v59  ;;  %v114_v7 = vmul.f32 %v82_v31, %v66_v4 }
  0x2e   :  { %141 = vst [vmem:[#allocation7 + $0xa8] sm:$0xff] %v109_v60  ;;  %142 = vst [vmem:[#allocation7 + $0xb0] sm:$0xff] %v110_v61  ;;  %v115_v8 = vmul.f32 %v83_v33, %v67_v5  ;;  %v116_v9 = vmul.f32 %v84_v37, %v68_v6  ;;  %v69_v10 = vld [vmem:[#allocation5 + $0xe8] sm:$0xff]  ;;  %v70_v11 = vld [vmem:[#allocation5 + $0xf0] sm:$0xff] }
  0x2f   :  { %v71_v12 = vld [vmem:[#allocation5 + $0xf8] sm:$0xff]  ;;  %143 = vst [vmem:[#allocation7 + $0xb8] sm:$0xff] %v111_v1  ;;  %144 = vst [vmem:[#allocation7 + $0xc0] sm:$0xff] %v112_v2  ;;  %v117_v13 = vmul.f32 %v85_v40, %v69_v10  ;;  %v118_v14 = vmul.f32 %v86_v42, %v70_v11 }
  0x30   :  { %145 = vst [vmem:[#allocation7 + $0xc8] sm:$0xff] %v113_v3  ;;  %v119_v15 = vmul.f32 %v87_v46, %v71_v12  ;;  %146 = vst [vmem:[#allocation7 + $0xd0] sm:$0xff] %v114_v7 }
  0x31   :  { %147 = vst [vmem:[#allocation7 + $0xd8] sm:$0xff] %v115_v8  ;;  %148 = vst [vmem:[#allocation7 + $0xe0] sm:$0xff] %v116_v9 }
  0x32   :  { %149 = vst [vmem:[#allocation7 + $0xe8] sm:$0xff] %v117_v13  ;;  %150 = vst [vmem:[#allocation7 + $0xf0] sm:$0xff] %v118_v14 }
  0x33   :  { %151 = vst [vmem:[#allocation7 + $0xf8] sm:$0xff] %v119_v15 }
  0x34   :  { %226 = shalt.err (!%p223_p0)
}
  0x35   :  { %163 = dma.vmem_to_hbm [thread:$0]  %s158_s1, 4096, %s289_s2, [#allocation4], %s242_s12, %s242_s12, %s243_s13  }
  0x36   :  { %239 = dma.done.wait [#allocation4], 4096  }
  0x37   :  { %240 = vsyncadd [#allocation4], 4294963200 }
  0x38   :  { %167 = vsyncpa [#allocation3], 1 }
  0x39   :  { %168 = vsyncpa [#allocation6], 1 }
  0x3a   :  { %169 = vsyncpa [#allocation4], 1 }

</bundles_post_ra>
